<compile_context>
chip_gen: v7x
topology: tpu7x:2x2x1
jax: 0.10.0
libtpu: 0.0.40
codegen_flags: <defaults>
</compile_context>

<pallas_src>
import functools

import jax
import jax.numpy as jnp
from jax import lax
from jax.experimental import pallas as pl
from jax.experimental.pallas import tpu as pltpu


_VALID_ACT = ("ReLU", "sigmoid", "tanh")


def _activation(name, x):
    if name == "ReLU":
        return jnp.maximum(x, 0.0)
    if name == "sigmoid":
        return jax.nn.sigmoid(x)
    if name == "tanh":
        return jnp.tanh(x)
    return x


def _mlp_kernel(x_ref, w1_ref, b1_ref, w2_ref, b2_ref, w3_ref, b3_ref, o_ref,
                *, activef):
    # Fused 3-layer MLP on one (block_b, D) batch tile.  Matmuls hit the MXU
    # with f32 accumulation; activations/bias adds run on the VPU/EUP in f32.
    x = x_ref[...]                                               # (block_b, D)

    h1 = jnp.dot(x, w1_ref[...],
                 preferred_element_type=jnp.float32) + b1_ref[...]
    h1 = _activation(activef, h1)                                # (block_b, 64) f32

    h2 = jnp.dot(h1.astype(w2_ref.dtype), w2_ref[...],
                 preferred_element_type=jnp.float32) + b2_ref[...]
    h2 = _activation(activef, h2)                                # (block_b, 16) f32

    # Final 16 -> 1 layer computed transposed so the batch lands on the lane
    # axis: (1, 16) contracted with (block_b, 16) over the 16-dim -> (1, block_b).
    outT = lax.dot_general(
        w3_ref[...], h2.astype(w3_ref.dtype),
        dimension_numbers=(((1,), (1,)), ((), ())),
        preferred_element_type=jnp.float32) + b3_ref[...]        # (1, block_b)

    o_ref[...] = outT.reshape(o_ref.shape).astype(o_ref.dtype)   # lane-dense store


def net_forward(x, params, activef, *, block_b=512, use_bf16=False):
    """Run the Net forward pass as a single fused Pallas kernel.

    x: (B, input_size) float32
    params: dict with w1 (in,64), b1 (1,64), w2 (64,16), b2 (1,16),
            w3 (16,1), b3 (1,1)
    """
    if activef not in _VALID_ACT:
        raise ValueError(f"activef must be one of {_VALID_ACT}, got {activef!r}")

    B, D = x.shape
    w1, b1 = params["w1"], params["b1"]
    w2, b2 = params["w2"], params["b2"]
    w3, b3 = params["w3"], params["b3"]
    H1, H2 = w1.shape[1], w2.shape[1]

    w3_row = w3.reshape(1, H2)       # (16, 1) -> (1, 16): last layer as a lane row
    b3 = b3.reshape(1, 1)

    if use_bf16:
        # Halves HBM/vld traffic for the streaming x and the weights (v6e/v7x).
        # Accumulation stays f32 via preferred_element_type; activations stay f32.
        x = x.astype(jnp.bfloat16)
        w1 = w1.astype(jnp.bfloat16)
        w2 = w2.astype(jnp.bfloat16)
        w3_row = w3_row.astype(jnp.bfloat16)

    num_blocks = pl.cdiv(B, block_b)
    b_pad = num_blocks * block_b
    if b_pad != B:
        x = jnp.pad(x, ((0, b_pad - B), (0, 0)))

    kernel = functools.partial(_mlp_kernel, activef=activef)

    out = pl.pallas_call(
        kernel,
        out_shape=jax.ShapeDtypeStruct((num_blocks, 1, block_b), jnp.float32),
        grid_spec=pltpu.PrefetchScalarGridSpec(
            num_scalar_prefetch=0,
            grid=(num_blocks,),
            in_specs=[
                # streaming batch tile of x
                pl.BlockSpec((block_b, D), lambda i: (i, 0)),
                # weights / biases: full arrays, same block every grid step
                pl.BlockSpec((D, H1), lambda i: (0, 0)),
                pl.BlockSpec((1, H1), lambda i: (0, 0)),
                pl.BlockSpec((H1, H2), lambda i: (0, 0)),
                pl.BlockSpec((1, H2), lambda i: (0, 0)),
                pl.BlockSpec((1, H2), lambda i: (0, 0)),
                pl.BlockSpec((1, 1), lambda i: (0, 0)),
            ],
            # lane-dense output: one (1, block_b) row per batch tile
            out_specs=pl.BlockSpec((1, 1, block_b), lambda i: (i, 0, 0)),
        ),
        compiler_params=pltpu.CompilerParams(
            dimension_semantics=("parallel",)),
    )(x, w1, b1, w2, b2, w3_row, b3)

    return out.reshape(b_pad, 1)[:B]


def init_params(key, input_size):
    """Deterministic synthetic parameters matching nn.Linear shapes (transposed)."""
    k1, k2, k3, k4, k5, k6 = jax.random.split(key, 6)
    w1 = jax.random.normal(k1, (input_size, 64), jnp.float32) * 0.1
    b1 = jax.random.normal(k2, (1, 64), jnp.float32) * 0.1
    w2 = jax.random.normal(k3, (64, 16), jnp.float32) * 0.1
    b2 = jax.random.normal(k4, (1, 16), jnp.float32) * 0.1
    w3 = jax.random.normal(k5, (16, 1), jnp.float32) * 0.1
    b3 = jax.random.normal(k6, (1, 1), jnp.float32) * 0.1
    return {"w1": w1, "b1": b1, "w2": w2, "b2": b2, "w3": w3, "b3": b3}


def _reference(x, p, activef):
    h1 = _activation(activef, x @ p["w1"] + p["b1"])
    h2 = _activation(activef, h1 @ p["w2"] + p["b2"])
    return h2 @ p["w3"] + p["b3"]


if __name__ == "__main__":
    key = jax.random.PRNGKey(0)
    kx1, kx2, kp = jax.random.split(key, 3)

    input_size = 32
    params = init_params(kp, input_size)

    # Case 1: ReLU, non-divisible batch, multi-block grid (exercises padding
    # and the lane-dense (1, block_b) output path).
    x1 = jax.random.normal(kx1, (300, input_size), jnp.float32)
    out1 = jax.block_until_ready(net_forward(x1, params, "ReLU", block_b=128))
    ref1 = _reference(x1, params, "ReLU")
    assert out1.shape == (300, 1)
    assert jnp.allclose(out1, ref1, atol=1e-4, rtol=1e-4)

    # Case 2: tanh, small batch, default (large) batch tile with padding.
    x2 = jax.random.normal(kx2, (16, input_size), jnp.float32)
    out2 = jax.block_until_ready(net_forward(x2, params, "tanh"))
    ref2 = _reference(x2, params, "tanh")
    assert out2.shape == (16, 1)
    assert jnp.allclose(out2, ref2, atol=1e-4, rtol=1e-4)

    print("KERNEL_OK")
</pallas_src>

<mosaic_0001>
module attributes {stable_mosaic.version = 11 : i64} {
  func.func @_mlp_kernel(%arg0: i32, %arg1: memref<128x32xf32, #tpu.memory_space<vmem>>, %arg2: memref<32x64xf32, #tpu.memory_space<vmem>>, %arg3: memref<1x64xf32, #tpu.memory_space<vmem>>, %arg4: memref<64x16xf32, #tpu.memory_space<vmem>>, %arg5: memref<1x16xf32, #tpu.memory_space<vmem>>, %arg6: memref<1x16xf32, #tpu.memory_space<vmem>>, %arg7: memref<1x1xf32, #tpu.memory_space<vmem>>, %arg8: memref<1x1x128xf32, #tpu.memory_space<vmem>>) attributes {dimension_semantics = [#tpu.dimension_semantics<parallel>], iteration_bounds = array<i64: 3>, scalar_prefetch = 0 : i64, scratch_operands = 0 : i64, tpu.core_type = #tpu.core_type<tc>, window_params = [{transform_indices = @transform_0, window_bounds = array<i64: 128, 32>}, {pipeline_mode = #tpu.pipeline_mode<synchronous>, transform_indices = @transform_1, window_bounds = array<i64: 32, 64>}, {pipeline_mode = #tpu.pipeline_mode<synchronous>, transform_indices = @transform_2, window_bounds = array<i64: 1, 64>}, {pipeline_mode = #tpu.pipeline_mode<synchronous>, transform_indices = @transform_3, window_bounds = array<i64: 64, 16>}, {pipeline_mode = #tpu.pipeline_mode<synchronous>, transform_indices = @transform_4, window_bounds = array<i64: 1, 16>}, {pipeline_mode = #tpu.pipeline_mode<synchronous>, transform_indices = @transform_5, window_bounds = array<i64: 1, 16>}, {pipeline_mode = #tpu.pipeline_mode<synchronous>, transform_indices = @transform_6, window_bounds = array<i64: 1, 1>}, {transform_indices = @transform_7, window_bounds = array<i64: 1, 1, 128>}]} {
    %c0 = arith.constant 0 : index
    %c0_0 = arith.constant 0 : index
    %0 = vector.load %arg1[%c0, %c0_0] : memref<128x32xf32, #tpu.memory_space<vmem>>, vector<128x32xf32>
    %c0_1 = arith.constant 0 : index
    %c0_2 = arith.constant 0 : index
    %1 = vector.load %arg2[%c0_1, %c0_2] : memref<32x64xf32, #tpu.memory_space<vmem>>, vector<32x64xf32>
    %cst = arith.constant dense<0.000000e+00> : vector<128x64xf32>
    %2 = tpu.matmul %0, %1, %cst {dimension_numbers = #tpu.dot_dimension_numbers<[1], [0], [0], [1], [0, 0, 1, 1], [], []>} : vector<128x32xf32>, vector<32x64xf32>, vector<128x64xf32> -> vector<128x64xf32>
    %c0_3 = arith.constant 0 : index
    %c0_4 = arith.constant 0 : index
    %3 = vector.load %arg3[%c0_3, %c0_4] : memref<1x64xf32, #tpu.memory_space<vmem>>, vector<1x64xf32>
    %4 = vector.broadcast %3 : vector<1x64xf32> to vector<128x64xf32>
    %5 = arith.addf %2, %4 : vector<128x64xf32>
    %cst_5 = arith.constant 0.000000e+00 : f32
    %6 = vector.broadcast %cst_5 : f32 to vector<128x64xf32>
    %7 = arith.maximumf %5, %6 : vector<128x64xf32>
    %c0_6 = arith.constant 0 : index
    %c0_7 = arith.constant 0 : index
    %8 = vector.load %arg4[%c0_6, %c0_7] : memref<64x16xf32, #tpu.memory_space<vmem>>, vector<64x16xf32>
    %cst_8 = arith.constant dense<0.000000e+00> : vector<128x16xf32>
    %9 = tpu.matmul %7, %8, %cst_8 {dimension_numbers = #tpu.dot_dimension_numbers<[1], [0], [0], [1], [0, 0, 1, 1], [], []>} : vector<128x64xf32>, vector<64x16xf32>, vector<128x16xf32> -> vector<128x16xf32>
    %c0_9 = arith.constant 0 : index
    %c0_10 = arith.constant 0 : index
    %10 = vector.load %arg5[%c0_9, %c0_10] : memref<1x16xf32, #tpu.memory_space<vmem>>, vector<1x16xf32>
    %11 = vector.broadcast %10 : vector<1x16xf32> to vector<128x16xf32>
    %12 = arith.addf %9, %11 : vector<128x16xf32>
    %cst_11 = arith.constant 0.000000e+00 : f32
    %13 = vector.broadcast %cst_11 : f32 to vector<128x16xf32>
    %14 = arith.maximumf %12, %13 : vector<128x16xf32>
    %c0_12 = arith.constant 0 : index
    %c0_13 = arith.constant 0 : index
    %15 = vector.load %arg6[%c0_12, %c0_13] : memref<1x16xf32, #tpu.memory_space<vmem>>, vector<1x16xf32>
    %cst_14 = arith.constant dense<0.000000e+00> : vector<1x128xf32>
    %16 = tpu.matmul %15, %14, %cst_14 {dimension_numbers = #tpu.dot_dimension_numbers<[1], [1], [0], [0], [0, 0, 1, 0], [], []>} : vector<1x16xf32>, vector<128x16xf32>, vector<1x128xf32> -> vector<1x128xf32>
    %c0_15 = arith.constant 0 : index
    %c0_16 = arith.constant 0 : index
    %17 = vector.load %arg7[%c0_15, %c0_16] : memref<1x1xf32, #tpu.memory_space<vmem>>, vector<1x1xf32>
    %18 = vector.broadcast %17 : vector<1x1xf32> to vector<1x128xf32>
    %19 = arith.addf %16, %18 : vector<1x128xf32>
    %20 = vector.shape_cast %19 : vector<1x128xf32> to vector<1x1x128xf32>
    %c0_17 = arith.constant 0 : index
    %c0_18 = arith.constant 0 : index
    %c0_19 = arith.constant 0 : index
    %21 = vector.load %arg8[%c0_17, %c0_18, %c0_19] : memref<1x1x128xf32, #tpu.memory_space<vmem>>, vector<1x1x128xf32>
    tpu.vector_store %arg8[%c0_17, %c0_18, %c0_19], %20 {strides = array<i32>} : memref<1x1x128xf32, #tpu.memory_space<vmem>>, vector<1x1x128xf32>,
    return
  }
  func.func @transform_0(%arg0: i32) -> (i32, i32) {
    %c0_i32 = arith.constant 0 : i32
    %c0_i32_0 = arith.constant 0 : i32
    return %arg0, %c0_i32 : i32, i32
  }
  func.func @transform_1(%arg0: i32) -> (i32, i32) {
    %c0_i32 = arith.constant 0 : i32
    %c0_i32_0 = arith.constant 0 : i32
    %c0_i32_1 = arith.constant 0 : i32
    return %c0_i32, %c0_i32_0 : i32, i32
  }
  func.func @transform_2(%arg0: i32) -> (i32, i32) {
    %c0_i32 = arith.constant 0 : i32
    %c0_i32_0 = arith.constant 0 : i32
    %c0_i32_1 = arith.constant 0 : i32
    return %c0_i32, %c0_i32_0 : i32, i32
  }
  func.func @transform_3(%arg0: i32) -> (i32, i32) {
    %c0_i32 = arith.constant 0 : i32
    %c0_i32_0 = arith.constant 0 : i32
    %c0_i32_1 = arith.constant 0 : i32
    return %c0_i32, %c0_i32_0 : i32, i32
  }
  func.func @transform_4(%arg0: i32) -> (i32, i32) {
    %c0_i32 = arith.constant 0 : i32
    %c0_i32_0 = arith.constant 0 : i32
    %c0_i32_1 = arith.constant 0 : i32
    return %c0_i32, %c0_i32_0 : i32, i32
  }
  func.func @transform_5(%arg0: i32) -> (i32, i32) {
    %c0_i32 = arith.constant 0 : i32
    %c0_i32_0 = arith.constant 0 : i32
    %c0_i32_1 = arith.constant 0 : i32
    return %c0_i32, %c0_i32_0 : i32, i32
  }
  func.func @transform_6(%arg0: i32) -> (i32, i32) {
    %c0_i32 = arith.constant 0 : i32
    %c0_i32_0 = arith.constant 0 : i32
    %c0_i32_1 = arith.constant 0 : i32
    return %c0_i32, %c0_i32_0 : i32, i32
  }
  func.func @transform_7(%arg0: i32) -> (i32, i32, i32) {
    %c0_i32 = arith.constant 0 : i32
    %c0_i32_0 = arith.constant 0 : i32
    %c0_i32_1 = arith.constant 0 : i32
    return %arg0, %c0_i32, %c0_i32_0 : i32, i32, i32
  }
}

</mosaic_0001>

<bundles_post_ra>
// kernel: tpu_custom_call.1
= control target key start
LH: loop header
LB: loop body
LE: loop exit
PB: predicated region body
PF: predicated region fallthrough
CT: control target
= control target key end

     0   :  { %s1609_s0 = inlined_call_operand.vmem [shape: f32[384,32], index: 0, kind: input, shape index: {}]   ;;  %s1610_s1 = inlined_call_operand.vmem [shape: f32[32,64], index: 1, kind: input, shape index: {}]   ;;  %s1611_s2 = inlined_call_operand.vmem [shape: f32[1,64], index: 2, kind: input, shape index: {}]   ;;  %s1612_s3 = inlined_call_operand.vmem [shape: f32[64,16], index: 3, kind: input, shape index: {}]   ;;  %s1613_s4 = inlined_call_operand.vmem [shape: f32[1,16], index: 4, kind: input, shape index: {}]   ;;  %s1614_s5 = inlined_call_operand.vmem [shape: f32[1,16], index: 5, kind: input, shape index: {}]   ;;  %s1615_s6 = inlined_call_operand.<no memory space> [shape: f32[1,1], index: 6, kind: input, shape index: {}]   ;;  %s1616_s7 = inlined_call_operand.hbm [shape: f32[3,1,128], index: 7, kind: output, shape index: {}]  }
   0x1   :  { %v12_v0 = vstv %s1615_s6 }
   0x2   :  { %13 = vst [vmem:[#allocation2] sm:$0x1] %v12_v0 }
   0x3   :  { %14 = vsyncpa [#allocation4], 0 }
   0x4   :  { %16 = vsyncpa [#allocation4 + $0x1], 0  ;;  %s1384_s26 = smov 0   ;;  %s1386_s27 = smov 0  }
   0x5   :  { %s1388_s28 = smov 0   ;;  %s1390_s29 = smov 0  }
   0x6 LB: > { %s943_s6 = sadd.s32 4294967295, %s1334_s29   ;;  %s944_s30 = sadd.s32 4294967294, %s1334_s29   ;;  %s1334_s29 = sphi %s1390_s29, %s1624_s29   ;;  %s1330_s28 = sphi %s1388_s28, %s1623_s28   ;;  %s1326_s27 = sphi %s1386_s27, %s1622_s27   ;;  %s1322_s26 = sphi %s1384_s26, %s1621_s26  }
   0x7   : > { %s1407_s8 = sadd.s32 1, %s1334_s29   ;;  %s181_s9 = sadd.s32 1, %s1330_s28 }
   0x8   : > { %s178_s10 = ssub.s32 %s1334_s29, %s1407_s8  ;;  %p191_p0 = scmp.ne.s32.totalorder %s1330_s28, %s1326_s27 }
   0x9   : > { %p179_p1 = scmp.eq.s32.totalorder %s178_s10, 0  ;;  %p192_p2 = scmp.eq.s32.totalorder %s943_s6, 2 }
   0xa   : > { %p197_p3 = scmp.ne.s32.totalorder %s1326_s27, %s1322_s26  ;;  %p198_p4 = scmp.eq.s32.totalorder %s944_s30, 2 }
   0xb   : > { %s1417_s11 = scalar_select %p179_p1, %s1330_s28, %s181_s9  }
   0xc   : > { %p1419_p5 = por %p192_p2, %p191_p0  ;;  %p1423_p6 = por %p198_p4, %p197_p3 }
   0xd   : > { %p947_p7 = scmp.ge.s32.totalorder %s1334_s29, 1  ;;  %p243_p8 = scmp.lt.s32.totalorder %s1334_s29, 4 }
   0xf   : > { %p244_p9 = pnand %p947_p7, %p243_p8 }
  0x10   : > { %v296_v1 = vld [vmem:[%s1610_s1] sm:$0xff] (!%p244_p9)  ;;  %v297_v2 = vld [vmem:[%s1610_s1 + $0x8] sm:$0xff] (!%p244_p9)  ;;  %v298_v3 = vld [vmem:[%s1610_s1 + $0x10] sm:$0xff] (!%p244_p9)  ;;  %s1438_s20 = sshll.u32 (!%p244_p9), %s943_s6, 4  ;;  %vm307_vm0 = vcmask (!%p244_p9), 261120   ;;  %vm532_vm1 = vcmask (!%p244_p9), 523264  }
  0x11   : > { %247 = sbr.rel (%p244_p9) target bundleno = 758 (0x2f6), region = 48  ;;  %v1172_v4 = vpack.c.bf16 (!%p244_p9), %v297_v2, %v296_v1  ;;  %v299_v5 = vld [vmem:[%s1610_s1 + $0x18] sm:$0xff] (!%p244_p9)  ;;  %p275_p10 = scmp.lt.s32.totalorder (!%p244_p9), %s1438_s20, 47  ;;  %v517_v7 = vld [vmem:[%s1612_s3] sm:$0xff] (!%p244_p9)  ;;  %v518_v8 = vld [vmem:[%s1612_s3 + $0x8] sm:$0xff] (!%p244_p9)  ;;  %vm1337_vm2 = vmmov (!%p244_p9), 0  }
  0x12   : > { %v1176_v6 = vpack.c.bf16 (!%p244_p9), %v299_v5, %v298_v3  ;;  %v1180_v9 = vpack.c.bf16 (!%p244_p9), %v518_v8, %v517_v7  ;;  %v519_v10 = vld [vmem:[%s1612_s3 + $0x10] sm:$0xff] (!%p244_p9)  ;;  %v520_v11 = vld [vmem:[%s1612_s3 + $0x18] sm:$0xff] (!%p244_p9)  ;;  %v521_v16 = vld [vmem:[%s1612_s3 + $0x20] sm:$0xff] (!%p244_p9)  ;;  %vm753_vm3 = vcmask (!%p244_p9), 130048   ;;  %s272_s19 = sand.u32 (!%p244_p9), 1, %s1326_s27   ;;  %s1567_s25 = scalar_lea.hbm (!%p244_p9), %s1616_s7, %s1438_s20 }
  0x13   : > { %1173 = vmatprep.subr.bf16.mxu1 (!%p244_p9), %v1172_v4  ;;  %v1184_v15 = vpack.c.bf16 (!%p244_p9), %v520_v11, %v519_v10  ;;  %v522_v17 = vld [vmem:[%s1612_s3 + $0x28] sm:$0xff] (!%p244_p9)  ;;  %v523_v21 = vld [vmem:[%s1612_s3 + $0x30] sm:$0xff] (!%p244_p9)  ;;  %v524_v22 = vld [vmem:[%s1612_s3 + $0x38] sm:$0xff] (!%p244_p9)  ;;  %s273_s21 = scalar_lea.vmem (!%p244_p9), [#allocation3], %s272_s19  ;;  %s877_s30 = scalar_lea.sflag (!%p244_p9), [#allocation4], %s272_s19 }
  0x14   : > { %1175 = vmatpush3.bf16.msra.mxu1 (!%p244_p9), %v1172_v4  ;;  %v1188_v20 = vpack.c.bf16 (!%p244_p9), %v522_v17, %v521_v16  ;;  %v1192_v25 = vpack.c.bf16 (!%p244_p9), %v524_v22, %v523_v21  ;;  %v950_v35 = vld [vmem:[%s1611_s2] ss:$0 sm:$0xff] (!%p244_p9)  ;;  %v1338_v21 = vmov (!%p244_p9), 0.0   ;;  %vm1531_vm4 = vmpackc.low (!%p244_p9), %vm753_vm3, %vm753_vm3  ;;  %s889_s22 = sshll.u32 (!%p244_p9), %s273_s21, 4  ;;  %s1569_s22 = int_to_ptr.vmem [resolvable:$true] %s889_s22 }
  0x15   : > { %1177 = vmatprep.subr.bf16.mxu1 (!%p244_p9), %v1176_v6  ;;  %1169 = vmatprep.mubr.msk.f32.mxu0 (!%p244_p9), %vm1337_vm2, %v1338_v21  ;;  %v743_v22 = vld [vmem:[#allocation2] sm:$0x1] (!%p244_p9) }
  0x18   : > { %s276_s6 = scalar_select %p275_p10, %s1438_s20, 47  ;;  %1179 = vmatpush3.bf16.msra.mxu1 %v1176_v6 }
  0x19   : > { %1181 = vmatprep.subr.bf16.mxu1 %v1180_v9 }
  0x1a   : > { %s949_s9 = sshll.u32 %s276_s6, 3  ;;  %s1272_s6 = scalar_lea.vmem %s1569_s22, 16 }
  0x1b   : > { %s1454_s15 = scalar_lea.vmem %s1609_s0, %s949_s9  ;;  %p1273_p11 = scmp.ne.s32.totalorder %s1569_s22, %s1272_s6 }
  0x1c   : > { %v280_v12 = vld [vmem:[%s1454_s15] sm:$0xff]  ;;  %v281_v13 = vld [vmem:[%s1454_s15 + $0x8] sm:$0xff]  ;;  %v282_v14 = vld [vmem:[%s1454_s15 + $0x10] sm:$0xff]  ;;  %s1340_s9 = smov [#allocation3]  }
  0x1d   : > { %1073 = vmatprep.mubr.msk.f32.mxu1 %vm307_vm0, %v280_v12  ;;  %v283_v18 = vld [vmem:[%s1454_s15 + $0x18] sm:$0xff]  ;;  %v284_v19 = vld [vmem:[%s1454_s15 + $0x20] sm:$0xff]  ;;  %v285_v23 = vld [vmem:[%s1454_s15 + $0x28] sm:$0xff]  ;;  %p1274_p12 = pnand %p1273_p11, %p1419_p5  ;;  %s1276_s10 = sshll.u32 %s1340_s9, 4  ;;  %s1277_s10 = int_to_ptr.vmem [resolvable:$false] %s1276_s10 }
  0x1e   : > { %1074 = vmatmul.mubr.msk.f32.vlgmr.msra.gmra.mrb[0].mxu1 %vm307_vm0, %v281_v13  ;;  %v286_v24 = vld [vmem:[%s1454_s15 + $0x30] sm:$0xff]  ;;  %v287_v26 = vld [vmem:[%s1454_s15 + $0x38] sm:$0xff]  ;;  %v288_v27 = vld [vmem:[%s1454_s15 + $0x40] sm:$0xff]  ;;  %s1278_s14 = scalar_lea.vmem %s1277_s10, 32  ;;  %p1279_p0 = scmp.lt.s32.totalorder %s1569_s22, %s1277_s10 }
  0x1f   : > { %1076 = vmatprep.mubr.msk.f32.mxu1 %vm307_vm0, %v282_v14  ;;  %1183 = vmatpush3.bf16.msra.mxu1 %v1180_v9  ;;  %v289_v28 = vld [vmem:[%s1454_s15 + $0x48] sm:$0xff]  ;;  %v290_v29 = vld [vmem:[%s1454_s15 + $0x50] sm:$0xff]  ;;  %v291_v30 = vld [vmem:[%s1454_s15 + $0x58] sm:$0xff]  ;;  %p1275_p13 = pneg %p1274_p12  ;;  %p1280_p1 = scmp.lt.s32.totalorder %s1278_s14, %s1272_s6 }
  0x20   : > { %1185 = vmatprep.subr.bf16.mxu1 %v1184_v15  ;;  %v292_v31 = vld [vmem:[%s1454_s15 + $0x60] sm:$0xff]  ;;  %v293_v32 = vld [vmem:[%s1454_s15 + $0x68] sm:$0xff]  ;;  %v294_v33 = vld [vmem:[%s1454_s15 + $0x70] sm:$0xff] }
  0x21   : > { %v295_v34 = vld [vmem:[%s1454_s15 + $0x78] sm:$0xff]  ;;  %p1281_p2 = por %p1280_p1, %p1279_p0 }
  0x22   : > { %1077 = vmatmul.mubr.msk.f32.gmra.mrb[2].mxu1 %vm307_vm0, %v283_v18 }
  0x23   : > { %1079 = vmatprep.mubr.msk.f32.mxu1 %vm307_vm0, %v284_v19  ;;  %1187 = vmatpush3.bf16.msra.mxu1 %v1184_v15  ;;  %p1282_p3 = pnand %p1281_p2, %p1275_p13 }
  0x24   : > { %1189 = vmatprep.subr.bf16.mxu1 %v1188_v20 }
  0x26   : > { %1080 = vmatmul.mubr.msk.f32.gmra.mrb[4].mxu1 %vm307_vm0, %v285_v23  ;;  %v1339_v23 = vmov 0  }
  0x27   : > { %1082 = vmatprep.mubr.msk.f32.mxu1 %vm307_vm0, %v286_v24  ;;  %1191 = vmatpush3.bf16.msra.mxu1 %v1188_v20  ;;  %v1336_v20 = vmov 0.0|0.0   ;;  %v967_v24 = vld [vmem:[%s1613_s4] ss:$0 sm:$0xff] }
  0x28   : > { %1193 = vmatprep.subr.bf16.mxu1 %v1192_v25  ;;  %1196 = vmatprep.subr.bf16.mxu0 %v1336_v20 }
  0x29   : > { %1271 = vset.pattern.permute.xlu0 %v1339_v23 }
  0x2a   : > { %1083 = vmatmul.mubr.msk.f32.gmra.mrb[6].mxu1 %vm307_vm0, %v287_v26  ;;  %746 = vperm.xlu0 %1271, %v743_v22  }
  0x2b   : > { %1085 = vmatprep.mubr.msk.f32.mxu1 %vm307_vm0, %v288_v27  ;;  %1195 = vmatpush3.bf16.msra.mxu1 %v1192_v25 }
  0x2e   : > { %1086 = vmatmul.mubr.msk.f32.gmra.mrb[8].mxu1 %vm307_vm0, %v289_v28 }
  0x2f   : > { %1088 = vmatprep.mubr.msk.f32.mxu1 %vm307_vm0, %v290_v29 }
  0x32   : > { %1089 = vmatmul.mubr.msk.f32.gmra.mrb[10].mxu1 %vm307_vm0, %v291_v30 }
  0x33   : > { %1091 = vmatprep.mubr.msk.f32.mxu1 %vm307_vm0, %v292_v31 }
  0x36   : > { %1092 = vmatmul.mubr.msk.f32.gmra.mrb[12].mxu1 %vm307_vm0, %v293_v32 }
  0x37   : > { %1094 = vmatprep.mubr.msk.f32.mxu1 %vm307_vm0, %v294_v33 }
  0x3a   : > { %1095 = vmatmul.mubr.msk.f32.gmra.mrb[14].mxu1 %vm307_vm0, %v295_v34 }
  0xa9   : > { %v747_v23 = vpop.permute.xlu0 %746 }
  0xf1   : > { %v1075_v36 = vpop.f32.mrb[0].mxu1 }
  0xf2   : > { %v428_v37 = vadd.f32 %v1075_v36, %v950_v35  ;;  %v422_v38 = vpop.f32.mrb[1].mxu1 }
  0xf3   : > { %v423_v39 = vadd.f32 %v950_v35, %v422_v38 }
  0xf4   : > { %v502_v42 = vmax.f32 %v428_v37, 0.0 }
  0xf5   : > { %v501_v40 = vmax.f32 %v423_v39, 0.0  ;;  %v1078_v41 = vpop.f32.mrb[2].mxu1 }
  0xf6   : > { %v438_v43 = vadd.f32 %v1078_v41, %v950_v35  ;;  %v432_v44 = vpop.f32.mrb[3].mxu1 }
  0xf7   : > { %v433_v45 = vadd.f32 %v950_v35, %v432_v44  ;;  %1113 = vmatprep.mubr.msk.f32.mxu1 %vm532_vm1, %v501_v40 }
  0xf8   : > { %v504_v46 = vmax.f32 %v438_v43, 0.0  ;;  %1114 = vmatmul.mubr.msk.f32.vlgmr.msra.gmra.mrb[16].mxu1 %vm532_vm1, %v502_v42 }
  0xf9   : > { %v503_v47 = vmax.f32 %v433_v45, 0.0  ;;  %v1081_v48 = vpop.f32.mrb[4].mxu1 }
  0xfa   : > { %v448_v49 = vadd.f32 %v1081_v48, %v950_v35  ;;  %v442_v50 = vpop.f32.mrb[5].mxu1 }
  0xfb   : > { %1116 = vmatprep.mubr.msk.f32.mxu1 %vm532_vm1, %v503_v47  ;;  %v443_v51 = vadd.f32 %v950_v35, %v442_v50 }
  0xfc   : > { %1117 = vmatmul.mubr.msk.f32.gmra.mrb[18].mxu1 %vm532_vm1, %v504_v46  ;;  %v506_v52 = vmax.f32 %v448_v49, 0.0 }
  0xfd   : > { %v505_v53 = vmax.f32 %v443_v51, 0.0  ;;  %v1084_v54 = vpop.f32.mrb[6].mxu1 }
  0xfe   : > { %v458_v55 = vadd.f32 %v1084_v54, %v950_v35  ;;  %v452_v56 = vpop.f32.mrb[7].mxu1 }
  0xff   : > { %1119 = vmatprep.mubr.msk.f32.mxu1 %vm532_vm1, %v505_v53  ;;  %v453_v57 = vadd.f32 %v950_v35, %v452_v56 }
 0x100   : > { %1120 = vmatmul.mubr.msk.f32.gmra.mrb[20].mxu1 %vm532_vm1, %v506_v52  ;;  %v508_v58 = vmax.f32 %v458_v55, 0.0 }
 0x101   : > { %v507_v59 = vmax.f32 %v453_v57, 0.0  ;;  %v1087_v60 = vpop.f32.mrb[8].mxu1 }
 0x102   : > { %v468_v61 = vadd.f32 %v1087_v60, %v950_v35  ;;  %v462_v62 = vpop.f32.mrb[9].mxu1 }
 0x103   : > { %1122 = vmatprep.mubr.msk.f32.mxu1 %vm532_vm1, %v507_v59  ;;  %v463_v63 = vadd.f32 %v950_v35, %v462_v62 }
 0x104   : > { %1123 = vmatmul.mubr.msk.f32.gmra.mrb[22].mxu1 %vm532_vm1, %v508_v58  ;;  %v510_v0 = vmax.f32 %v468_v61, 0.0 }
 0x105   : > { %v509_v1 = vmax.f32 %v463_v63, 0.0  ;;  %v1090_v2 = vpop.f32.mrb[10].mxu1 }
 0x106   : > { %v478_v3 = vadd.f32 %v1090_v2, %v950_v35  ;;  %v472_v4 = vpop.f32.mrb[11].mxu1 }
 0x107   : > { %1125 = vmatprep.mubr.msk.f32.mxu1 %vm532_vm1, %v509_v1  ;;  %v473_v5 = vadd.f32 %v950_v35, %v472_v4 }
 0x108   : > { %1126 = vmatmul.mubr.msk.f32.gmra.mrb[24].mxu1 %vm532_vm1, %v510_v0  ;;  %v512_v6 = vmax.f32 %v478_v3, 0.0 }
 0x109   : > { %v511_v7 = vmax.f32 %v473_v5, 0.0  ;;  %v1093_v8 = vpop.f32.mrb[12].mxu1 }
 0x10a   : > { %v488_v9 = vadd.f32 %v1093_v8, %v950_v35  ;;  %v482_v10 = vpop.f32.mrb[13].mxu1 }
 0x10b   : > { %1128 = vmatprep.mubr.msk.f32.mxu1 %vm532_vm1, %v511_v7  ;;  %v483_v11 = vadd.f32 %v950_v35, %v482_v10 }
 0x10c   : > { %1129 = vmatmul.mubr.msk.f32.gmra.mrb[26].mxu1 %vm532_vm1, %v512_v6  ;;  %v514_v12 = vmax.f32 %v488_v9, 0.0 }
 0x10d   : > { %v513_v13 = vmax.f32 %v483_v11, 0.0  ;;  %v1096_v14 = vpop.f32.mrb[14].mxu1 }
 0x10e   : > { %v498_v15 = vadd.f32 %v1096_v14, %v950_v35  ;;  %v492_v16 = vpop.f32.mrb[15].mxu1 }
 0x10f   : > { %1131 = vmatprep.mubr.msk.f32.mxu1 %vm532_vm1, %v513_v13  ;;  %v493_v17 = vadd.f32 %v950_v35, %v492_v16 }
 0x110   : > { %1132 = vmatmul.mubr.msk.f32.gmra.mrb[28].mxu1 %vm532_vm1, %v514_v12  ;;  %v516_v18 = vmax.f32 %v498_v15, 0.0 }
 0x111   : > { %v515_v19 = vmax.f32 %v493_v17, 0.0 }
 0x113   : > { %1134 = vmatprep.mubr.msk.f32.mxu1 %vm532_vm1, %v515_v19  ;;  %v749_v19 = vlaneseq }
 0x114   : > { %1135 = vmatmul.mubr.msk.f32.gmra.mrb[30].mxu1 %vm532_vm1, %v516_v18  ;;  %v742_v18 = vld [vmem:[%s1614_s5] sm:$0x1] }
 0x115   : > { %v750_v21 = vshrl.u32 %v749_v19, 7 }
 0x117   : > { %v751_v22 = vsub.s32 0, %v750_v21 }
 0x1cb   : > { %v1115_v25 = vpop.f32.mrb[16].mxu1 }
 0x1cc   : > { %v653_v26 = vadd.f32 %v1115_v25, %v967_v24  ;;  %v647_v27 = vpop.f32.mrb[17].mxu1 }
 0x1cd   : > { %v648_v28 = vadd.f32 %v967_v24, %v647_v27 }
 0x1ce   : > { %v727_v29 = vmax.f32 %v653_v26, 0.0 }
 0x1cf   : > { %v726_v30 = vmax.f32 %v648_v28, 0.0  ;;  %v1118_v31 = vpop.f32.mrb[18].mxu1 }
 0x1d0   : > { %v663_v32 = vadd.f32 %v1118_v31, %v967_v24  ;;  %v657_v33 = vpop.f32.mrb[19].mxu1 }
 0x1d1   : > { %v1197_v35 = vpack.c.bf16 %v727_v29, %v726_v30  ;;  %v658_v36 = vadd.f32 %v967_v24, %v657_v33 }
 0x1d2   : > { %v729_v37 = vmax.f32 %v663_v32, 0.0 }
 0x1d3   : > { %v728_v38 = vmax.f32 %v658_v36, 0.0  ;;  %1199 = vmatpush3.bf16.xpose.msk.msra.mxu0 %vm1531_vm4, %v1197_v35  ;;  %v1121_v39 = vpop.f32.mrb[20].mxu1 }
 0x1d4   : > { %v673_v40 = vadd.f32 %v1121_v39, %v967_v24  ;;  %v667_v41 = vpop.f32.mrb[21].mxu1  ;;  %1200 = vmatprep.subr.bf16.mxu0 %v1336_v20 }
 0x1d5   : > { %v1201_v42 = vpack.c.bf16 %v729_v37, %v728_v38  ;;  %v668_v43 = vadd.f32 %v967_v24, %v667_v41 }
 0x1d6   : > { %v731_v44 = vmax.f32 %v673_v40, 0.0 }
 0x1d7   : > { %v730_v45 = vmax.f32 %v668_v43, 0.0  ;;  %v1124_v46 = vpop.f32.mrb[22].mxu1 }
 0x1d8   : > { %v683_v47 = vadd.f32 %v1124_v46, %v967_v24  ;;  %v677_v48 = vpop.f32.mrb[23].mxu1 }
 0x1d9   : > { %v1205_v49 = vpack.c.bf16 %v731_v44, %v730_v45  ;;  %v678_v50 = vadd.f32 %v967_v24, %v677_v48 }
 0x1da   : > { %v733_v51 = vmax.f32 %v683_v47, 0.0 }
 0x1db   : > { %1203 = vmatpush3.bf16.xpose.msk.msra.mxu0 %vm1531_vm4, %v1201_v42  ;;  %v732_v52 = vmax.f32 %v678_v50, 0.0  ;;  %v1127_v53 = vpop.f32.mrb[24].mxu1 }
 0x1dc   : > { %1204 = vmatprep.subr.bf16.mxu0 %v1336_v20  ;;  %v693_v54 = vadd.f32 %v1127_v53, %v967_v24  ;;  %v687_v55 = vpop.f32.mrb[25].mxu1 }
 0x1dd   : > { %v1209_v56 = vpack.c.bf16 %v733_v51, %v732_v52  ;;  %v688_v57 = vadd.f32 %v967_v24, %v687_v55 }
 0x1de   : > { %v735_v58 = vmax.f32 %v693_v54, 0.0 }
 0x1df   : > { %v734_v59 = vmax.f32 %v688_v57, 0.0  ;;  %v1130_v60 = vpop.f32.mrb[26].mxu1 }
 0x1e0   : > { %v703_v61 = vadd.f32 %v1130_v60, %v967_v24  ;;  %v697_v62 = vpop.f32.mrb[27].mxu1 }
 0x1e1   : > { %v1213_v63 = vpack.c.bf16 %v735_v58, %v734_v59  ;;  %v698_v0 = vadd.f32 %v967_v24, %v697_v62 }
 0x1e2   : > { %v737_v1 = vmax.f32 %v703_v61, 0.0 }
 0x1e3   : > { %1207 = vmatpush3.bf16.xpose.msk.msra.mxu0 %vm1531_vm4, %v1205_v49  ;;  %v736_v2 = vmax.f32 %v698_v0, 0.0  ;;  %v1133_v3 = vpop.f32.mrb[28].mxu1 }
 0x1e4   : > { %1208 = vmatprep.subr.bf16.mxu0 %v1336_v20  ;;  %v713_v4 = vadd.f32 %v1133_v3, %v967_v24  ;;  %v707_v5 = vpop.f32.mrb[29].mxu1 }
 0x1e5   : > { %v1217_v6 = vpack.c.bf16 %v737_v1, %v736_v2  ;;  %v708_v7 = vadd.f32 %v967_v24, %v707_v5 }
 0x1e6   : > { %v739_v8 = vmax.f32 %v713_v4, 0.0 }
 0x1e7   : > { %v738_v9 = vmax.f32 %v708_v7, 0.0  ;;  %v1136_v10 = vpop.f32.mrb[30].mxu1 }
 0x1e8   : > { %v723_v11 = vadd.f32 %v1136_v10, %v967_v24  ;;  %v717_v12 = vpop.f32.mrb[31].mxu1 }
 0x1e9   : > { %v1221_v13 = vpack.c.bf16 %v739_v8, %v738_v9  ;;  %v718_v14 = vadd.f32 %v967_v24, %v717_v12  ;;  %v752_v24 = vrot.slane %v747_v23, %v751_v22 }
 0x1ea   : > { %v741_v15 = vmax.f32 %v723_v11, 0.0 }
 0x1eb   : > { %1211 = vmatpush3.bf16.xpose.msk.msra.mxu0 %vm1531_vm4, %v1209_v56  ;;  %v740_v16 = vmax.f32 %v718_v14, 0.0 }
 0x1ec   : > { %1212 = vmatprep.subr.bf16.mxu0 %v1336_v20 }
 0x1ed   : > { %v1225_v17 = vpack.c.bf16 %v741_v15, %v740_v16 }
 0x1f3   : > { %1215 = vmatpush3.bf16.xpose.msk.msra.mxu0 %vm1531_vm4, %v1213_v63 }
 0x1f4   : > { %1216 = vmatprep.subr.bf16.mxu0 %v1336_v20 }
 0x1fb   : > { %1219 = vmatpush3.bf16.xpose.msk.msra.mxu0 %vm1531_vm4, %v1217_v6 }
 0x1fc   : > { %1220 = vmatprep.subr.bf16.mxu0 %v1336_v20 }
 0x203   : > { %1223 = vmatpush3.bf16.xpose.msk.msra.mxu0 %vm1531_vm4, %v1221_v13 }
 0x204   : > { %1224 = vmatprep.subr.bf16.mxu0 %v1336_v20 }
 0x20b   : > { %1227 = vmatpush3.bf16.xpose.msk.msra.mxu0 %vm1531_vm4, %v1225_v17 }
 0x212   : > { %1170 = vmatmul.mubr.msk.f32.vlgmr.msra.gmra.mrb[0].mxu0 %vm753_vm3, %v742_v18 }
 0x2e5   : > { %v871_v25 = vpop.f32.mrb[0].mxu0 }
 0x2e6   : > { %v872_v20 = vadd.f32 %v871_v25, %v752_v24  ;;  %v1171_v26 = vpop.f32.mrb[1].mxu0 }
 0x2e8   : > { %875 = vst [vmem:[%s273_s21] sm:$0x1] %v872_v20 }
 0x2e9   : > { %1285 = shalt.err (!%p1282_p3)
}
 0x2ea   : > { %s1286_s20 = scalar_lea.hbm %s1567_s25, 16  ;;  %s1290_s17 = scalar_lea.hbm %s1616_s7, 48 }
 0x2eb   : > { %p1287_p4 = scmp.ne.s32.totalorder %s1567_s25, %s1286_s20  ;;  %p1291_p9 = scmp.lt.u32.totalorder %s1567_s25, %s1616_s7 }
 0x2ec   : > { %p1292_p10 = scmp.lt.u32.totalorder %s1290_s17, %s1286_s20  ;;  %p1294_p12 = scmp.lt.u32.totalorder %s1286_s20, %s1567_s25 }
 0x2ed   : > { %p1288_p7 = pnand %p1287_p4, %p1419_p5 }
 0x2ee   : > { %p1293_p11 = por %p1292_p10, %p1291_p9 }
 0x2ef   : > { %p1289_p8 = pneg %p1288_p7 }
 0x2f0   : > { %p1295_p13 = por %p1294_p12, %p1293_p11 }
 0x2f2   : > { %p1296_p0 = pnand %p1295_p13, %p1289_p8 }
 0x2f4   : > { %1299 = shalt.err (!%p1296_p0)
}
 0x2f5   : > { %1228 = dma.vmem_to_hbm [thread:$0]  (%p1419_p5), %s1569_s22, 16, %s1567_s25, %s877_s30  }
 0x2f6 PF: > { %p1234_p1 = scmp.ge.s32.totalorder %s1334_s29, 2  ;;  %s901_s21 = sand.u32 1, %s1322_s26  }
 0x2f7   : > { %s902_s23 = scalar_lea.sflag [#allocation4], %s901_s21 }
 0x2f8   : > { %p1231_p2 = pnand %p1234_p1, %p1423_p6 }
 0x2fa   : > { %1317 = dma.done.wait (!%p1231_p2), %s902_s23, 16  }
 0x2fb   : > { %1319 = vsyncadd (!%p1231_p2), %s902_s23, 4294967280  ;;  %p19_p3 = scmp.ge.s32.totalorder %s1407_s8, 5   ;;  %s1621_s26 = smov %s1326_s27 }
 0x2fc   : > { %s1622_s27 = smov %s1330_s28  ;;  %s1623_s28 = smov %s1417_s11 }
 0x2fd   : > { %s1624_s29 = smov %s1407_s8  ;;  %21 = sbr.rel (!%p19_p3) target bundleno = 6 (0x6), region = 83 }
 0x304   :  { %906 = vsyncpa [#allocation4], 1 }
 0x305   :  { %908 = vsyncpa [#allocation4 + $0x1], 1 }

</bundles_post_ra>
